<compile_context>
chip_gen: v5e
topology: v5e:2x2
jax: 0.10.0
libtpu: 0.0.40
codegen_flags: <defaults>
</compile_context>

<pallas_src>
import functools

import jax
import jax.numpy as jnp
from jax import lax
from jax.experimental import pallas as pl
from jax.experimental.pallas import tpu as pltpu


_VMEM_LIMIT_BYTES = 32 * 1024 * 1024      # >= default scoped limit on v5e/v6e/v7x
_Z_BLOCK_BUDGET_BYTES = 12 * 1024 * 1024  # double-buffered z block per pass


def _round_up(x, mult):
    return (x + mult - 1) // mult * mult


# ---------------------------------------------------------------------------
# Pass 1: per-meta-path node sums of the hidden projection.
#   hsum[p, :] = sum_n tanh(z[n, p, :] @ W1 + b1)
# Grid: node tiles (reduction axis, resident (M, H) accumulator).
# ---------------------------------------------------------------------------
def _score_kernel(z_ref, w1_ref, b1_ref, selt_ref, hsum_ref, *,
                  tile_r, total_rows, needs_mask):
    @pl.when(pl.program_id(0) == 0)
    def _init():
        hsum_ref[...] = jnp.zeros_like(hsum_ref)

    # One wide MXU matmul + tanh for every (node, meta-path) row of this tile.
    hproj = jnp.tanh(
        jnp.dot(z_ref[...], w1_ref[...], preferred_element_type=jnp.float32)
        + b1_ref[...])                                         # (tile_r, H)

    if needs_mask:
        # Rows past the real N*M extent belong to the partial tail block and
        # hold undefined data: zero their contribution exactly.  jnp.where is
        # a select, so NaN/Inf garbage cannot leak through.
        row = (pl.program_id(0) * tile_r
               + lax.broadcasted_iota(jnp.int32, (tile_r, 1), 0))
        hproj = jnp.where(row < total_rows, hproj, 0.0)

    # Per-meta-path node sum onto the resident full-width accumulator
    # (no single-row read-modify-writes).
    hsum_ref[...] += jnp.dot(selt_ref[...], hproj,
                             preferred_element_type=jnp.float32)


# ---------------------------------------------------------------------------
# Pass 2: out[n, :] = sum_p beta[p] * z[n, p, :]   (pure VPU weighted sum;
# garbage tail rows only produce garbage tail output rows, which Pallas
# discards on the partial out-of-bounds write).
# ---------------------------------------------------------------------------
def _combine_kernel(z_ref, beta_ref, out_ref):
    zb = z_ref[...].astype(jnp.float32)              # (tile_n, M, D)
    weighted = zb * beta_ref[...]                    # beta: (1, M, 1) broadcast
    out_ref[...] = jnp.sum(weighted, axis=1).astype(out_ref.dtype)


def semantic_attention(z, w1, b1, w2, *, max_tile_n=512):
    """HAN SemanticAttention forward.

    z : (N, M, D) float32 (PyTorch layout: nodes, meta-paths, features)
    w1: (D, H), b1: (1, H), w2: (H, 1)   [Linear(D,H), Tanh, Linear(H,1,no bias)]
    Returns (N, D).
    """
    n, m, d = z.shape
    h = w1.shape[1]
    itemsize = jnp.dtype(z.dtype).itemsize

    # ---- VMEM-aware node tiling (no padded copy; ragged tail masked) --------
    per_node = 2 * m * d * itemsize                  # double-buffered bytes/node
    cap = max(8, (_Z_BLOCK_BUDGET_BYTES // per_node) // 8 * 8)
    tile_n = max(8, min(max_tile_n, cap, _round_up(n, 8)))
    n_tiles = pl.cdiv(n, tile_n)
    needs_mask = (n % tile_n) != 0

    tile_r = tile_n * m                              # z rows per pass-1 step
    total_rows = n * m
    z_rows = z.reshape(total_rows, d)                # free contiguous view

    # Constant selector: sel_t[p, r] = 1 iff local row r belongs to meta-path p.
    # Block-index-invariant input -> DMA'd once; only ~M*tile_r*4 bytes of VMEM.
    sel_t = (jnp.arange(m, dtype=jnp.int32)[:, None]
             == (jnp.arange(tile_r, dtype=jnp.int32)[None, :] % m)
             ).astype(jnp.float32)                   # (M, tile_r)

    score_kernel = functools.partial(
        _score_kernel, tile_r=tile_r, total_rows=total_rows,
        needs_mask=needs_mask)

    # ---- Pass 1: hsum[p, :] = sum_n tanh(z[n, p, :] @ W1 + b1) --------------
    hsum = pl.pallas_call(
        score_kernel,
        out_shape=jax.ShapeDtypeStruct((m, h), jnp.float32),
        grid_spec=pltpu.PrefetchScalarGridSpec(
            num_scalar_prefetch=0,
            grid=(n_tiles,),
            in_specs=[
                pl.BlockSpec((tile_r, d), lambda i: (i, 0)),
                pl.BlockSpec((d, h), lambda i: (0, 0)),
                pl.BlockSpec((1, h), lambda i: (0, 0)),
                pl.BlockSpec((m, tile_r), lambda i: (0, 0)),
            ],
            out_specs=pl.BlockSpec((m, h), lambda i: (0, 0)),
        ),
        compiler_params=pltpu.CompilerParams(
            dimension_semantics=("arbitrary",),
            vmem_limit_bytes=_VMEM_LIMIT_BYTES),
    )(z_rows, w1, b1, sel_t)

    # Tiny (M, H)-sized epilogue: apply W2 once, average over nodes, softmax.
    w_scores = (hsum @ w2) / n                       # (M, 1) == mean_n project(z)
    beta = jax.nn.softmax(w_scores, axis=0)          # (M, 1)
    beta3 = beta.reshape(1, m, 1).astype(jnp.float32)

    # ---- Pass 2: out[n, :] = sum_p beta[p] * z[n, p, :] ---------------------
    out = pl.pallas_call(
        _combine_kernel,
        out_shape=jax.ShapeDtypeStruct((n, d), z.dtype),
        grid_spec=pltpu.PrefetchScalarGridSpec(
            num_scalar_prefetch=0,
            grid=(n_tiles,),
            in_specs=[
                pl.BlockSpec((tile_n, m, d), lambda i: (i, 0, 0)),
                pl.BlockSpec((1, m, 1), lambda i: (0, 0, 0)),
            ],
            out_specs=pl.BlockSpec((tile_n, d), lambda i: (i, 0)),
        ),
        compiler_params=pltpu.CompilerParams(
            dimension_semantics=("parallel",),
            vmem_limit_bytes=_VMEM_LIMIT_BYTES),
    )(z, beta3)

    return out


def semantic_attention_reference(z, w1, b1, w2):
    w = jnp.tanh(z @ w1 + b1) @ w2                   # (N, M, 1)
    w = w.mean(axis=0)                               # (M, 1)
    beta = jax.nn.softmax(w, axis=0)                 # (M, 1)
    return jnp.sum(beta[None, :, :] * z, axis=1)     # (N, D)


if __name__ == "__main__":
    # Small shapes consistent with the module: N nodes, M meta-paths,
    # in_size D, hidden H.
    N, M, D, H = 16, 4, 16, 32

    key = jax.random.PRNGKey(0)
    kz, k1, kb, k2 = jax.random.split(key, 4)

    z = jax.random.normal(kz, (N, M, D), dtype=jnp.float32)
    w1 = jax.random.normal(k1, (D, H), dtype=jnp.float32) * 0.1
    b1 = jax.random.normal(kb, (1, H), dtype=jnp.float32) * 0.1
    w2 = jax.random.normal(k2, (H, 1), dtype=jnp.float32) * 0.1

    out = jax.block_until_ready(semantic_attention(z, w1, b1, w2))
    ref = semantic_attention_reference(z, w1, b1, w2)
    assert out.shape == (N, D)
    assert jnp.allclose(out, ref, atol=1e-4, rtol=1e-4), (
        f"max abs err = {jnp.max(jnp.abs(out - ref))}")

    # Second check: ragged node count (no-pad path, in-kernel tail masking,
    # multi-tile reduction grid + partial output block).
    N2, M2, D2, H2 = 13, 3, 8, 16
    kz2, k12, kb2, k22 = jax.random.split(jax.random.PRNGKey(1), 4)
    z2 = jax.random.normal(kz2, (N2, M2, D2), dtype=jnp.float32)
    w12 = jax.random.normal(k12, (D2, H2), dtype=jnp.float32) * 0.1
    b12 = jax.random.normal(kb2, (1, H2), dtype=jnp.float32) * 0.1
    w22 = jax.random.normal(k22, (H2, 1), dtype=jnp.float32) * 0.1

    out2 = jax.block_until_ready(
        semantic_attention(z2, w12, b12, w22, max_tile_n=8))
    ref2 = semantic_attention_reference(z2, w12, b12, w22)
    assert out2.shape == (N2, D2)
    assert jnp.allclose(out2, ref2, atol=1e-4, rtol=1e-4), (
        f"max abs err (ragged) = {jnp.max(jnp.abs(out2 - ref2))}")

    print("KERNEL_OK")
</pallas_src>

<mosaic_0001>
module attributes {stable_mosaic.version = 11 : i64} {
  func.func @_score_kernel(%arg0: i32, %arg1: memref<64x16xf32, #tpu.memory_space<vmem>>, %arg2: memref<16x32xf32, #tpu.memory_space<vmem>>, %arg3: memref<1x32xf32, #tpu.memory_space<vmem>>, %arg4: memref<4x64xf32, #tpu.memory_space<vmem>>, %arg5: memref<4x32xf32, #tpu.memory_space<vmem>>) attributes {dimension_semantics = [#tpu.dimension_semantics<arbitrary>], iteration_bounds = array<i64: 1>, scalar_prefetch = 0 : i64, scratch_operands = 0 : i64, tpu.core_type = #tpu.core_type<tc>, window_params = [{transform_indices = @transform_0, window_bounds = array<i64: 64, 16>}, {pipeline_mode = #tpu.pipeline_mode<synchronous>, transform_indices = @transform_1, window_bounds = array<i64: 16, 32>}, {pipeline_mode = #tpu.pipeline_mode<synchronous>, transform_indices = @transform_2, window_bounds = array<i64: 1, 32>}, {pipeline_mode = #tpu.pipeline_mode<synchronous>, transform_indices = @transform_3, window_bounds = array<i64: 4, 64>}, {pipeline_mode = #tpu.pipeline_mode<synchronous>, transform_indices = @transform_4, window_bounds = array<i64: 4, 32>}]} {
    %c0_i32 = arith.constant 0 : i32
    %0 = arith.cmpi eq, %arg0, %c0_i32 : i32
    %1 = arith.extui %0 : i1 to i32
    %c0_i32_0 = arith.constant 0 : i32
    %2 = arith.cmpi ne, %1, %c0_i32_0 : i32
    scf.if %2 {
      %cst_13 = arith.constant 0.000000e+00 : f32
      %15 = vector.broadcast %cst_13 : f32 to vector<4x32xf32>
      %c0_14 = arith.constant 0 : index
      %c0_15 = arith.constant 0 : index
      %16 = vector.load %arg5[%c0_14, %c0_15] : memref<4x32xf32, #tpu.memory_space<vmem>>, vector<4x32xf32>
      tpu.vector_store %arg5[%c0_14, %c0_15], %15 {strides = array<i32>} : memref<4x32xf32, #tpu.memory_space<vmem>>, vector<4x32xf32>,
    } else {
    }
    %c0 = arith.constant 0 : index
    %c0_1 = arith.constant 0 : index
    %3 = vector.load %arg1[%c0, %c0_1] : memref<64x16xf32, #tpu.memory_space<vmem>>, vector<64x16xf32>
    %c0_2 = arith.constant 0 : index
    %c0_3 = arith.constant 0 : index
    %4 = vector.load %arg2[%c0_2, %c0_3] : memref<16x32xf32, #tpu.memory_space<vmem>>, vector<16x32xf32>
    %cst = arith.constant dense<0.000000e+00> : vector<64x32xf32>
    %5 = tpu.matmul %3, %4, %cst {dimension_numbers = #tpu.dot_dimension_numbers<[1], [0], [0], [1], [0, 0, 1, 1], [], []>} : vector<64x16xf32>, vector<16x32xf32>, vector<64x32xf32> -> vector<64x32xf32>
    %c0_4 = arith.constant 0 : index
    %c0_5 = arith.constant 0 : index
    %6 = vector.load %arg3[%c0_4, %c0_5] : memref<1x32xf32, #tpu.memory_space<vmem>>, vector<1x32xf32>
    %7 = vector.broadcast %6 : vector<1x32xf32> to vector<64x32xf32>
    %8 = arith.addf %5, %7 : vector<64x32xf32>
    %9 = math.tanh %8 : vector<64x32xf32>
    %c0_6 = arith.constant 0 : index
    %c0_7 = arith.constant 0 : index
    %10 = vector.load %arg5[%c0_6, %c0_7] : memref<4x32xf32, #tpu.memory_space<vmem>>, vector<4x32xf32>
    %c0_8 = arith.constant 0 : index
    %c0_9 = arith.constant 0 : index
    %11 = vector.load %arg4[%c0_8, %c0_9] : memref<4x64xf32, #tpu.memory_space<vmem>>, vector<4x64xf32>
    %cst_10 = arith.constant dense<0.000000e+00> : vector<4x32xf32>
    %12 = tpu.matmul %11, %9, %cst_10 {dimension_numbers = #tpu.dot_dimension_numbers<[1], [0], [0], [1], [0, 0, 1, 1], [], []>} : vector<4x64xf32>, vector<64x32xf32>, vector<4x32xf32> -> vector<4x32xf32>
    %13 = arith.addf %10, %12 : vector<4x32xf32>
    %c0_11 = arith.constant 0 : index
    %c0_12 = arith.constant 0 : index
    %14 = vector.load %arg5[%c0_11, %c0_12] : memref<4x32xf32, #tpu.memory_space<vmem>>, vector<4x32xf32>
    tpu.vector_store %arg5[%c0_11, %c0_12], %13 {strides = array<i32>} : memref<4x32xf32, #tpu.memory_space<vmem>>, vector<4x32xf32>,
    return
  }
  func.func @transform_0(%arg0: i32) -> (i32, i32) {
    %c0_i32 = arith.constant 0 : i32
    %c0_i32_0 = arith.constant 0 : i32
    return %arg0, %c0_i32 : i32, i32
  }
  func.func @transform_1(%arg0: i32) -> (i32, i32) {
    %c0_i32 = arith.constant 0 : i32
    %c0_i32_0 = arith.constant 0 : i32
    %c0_i32_1 = arith.constant 0 : i32
    return %c0_i32, %c0_i32_0 : i32, i32
  }
  func.func @transform_2(%arg0: i32) -> (i32, i32) {
    %c0_i32 = arith.constant 0 : i32
    %c0_i32_0 = arith.constant 0 : i32
    %c0_i32_1 = arith.constant 0 : i32
    return %c0_i32, %c0_i32_0 : i32, i32
  }
  func.func @transform_3(%arg0: i32) -> (i32, i32) {
    %c0_i32 = arith.constant 0 : i32
    %c0_i32_0 = arith.constant 0 : i32
    %c0_i32_1 = arith.constant 0 : i32
    return %c0_i32, %c0_i32_0 : i32, i32
  }
  func.func @transform_4(%arg0: i32) -> (i32, i32) {
    %c0_i32 = arith.constant 0 : i32
    %c0_i32_0 = arith.constant 0 : i32
    %c0_i32_1 = arith.constant 0 : i32
    return %c0_i32, %c0_i32_0 : i32, i32
  }
}

</mosaic_0001>

<bundles_post_ra>
// kernel: tpu_custom_call.1
= control target key start
LH: loop header
LB: loop body
LE: loop exit
PB: predicated region body
PF: predicated region fallthrough
CT: control target
= control target key end

     0   :  { %vm38_vm0 = vcmask 130048   ;;  %s291_s0 = inlined_call_operand.vmem [shape: f32[64,16], index: 0, kind: input, shape index: {}]   ;;  %s292_s1 = inlined_call_operand.vmem [shape: f32[16,32], index: 1, kind: input, shape index: {}]   ;;  %s293_s2 = inlined_call_operand.vmem [shape: f32[1,32], index: 2, kind: input, shape index: {}]   ;;  %s294_s3 = inlined_call_operand.vmem [shape: f32[4,64], index: 3, kind: input, shape index: {}]   ;;  %s295_s4 = inlined_call_operand.hbm [shape: f32[4,32], index: 4, kind: output, shape index: {}]  }
   0x1   :  { %v33_v0 = vld [vmem:[%s292_s1 + $0x8] sm:$0xff]  ;;  %v32_v1 = vld [vmem:[%s292_s1] sm:$0xff]  ;;  %v27_v2 = vld [vmem:[%s291_s0 + $0x18] sm:$0xff] }
   0x2   :  { %166 = vmatpush.msra.mxu2 %v33_v0  ;;  %167 = vmatpush.msra.mxu3 %v33_v0  ;;  %v30_v3 = vld [vmem:[%s291_s0 + $0x30] sm:$0xff]  ;;  %v24_v4 = vld [vmem:[%s291_s0] sm:$0xff] }
   0x3   :  { %77 = vmatpush.msra.mxu0 %v33_v0 }
   0x4   :  { %168 = vmatpush.msra.mxu2 %v32_v1  ;;  %169 = vmatpush.msra.mxu3 %v32_v1 }
   0x5   :  { %160 = vmatmul.msk.f32.vlgmr.msra.gmra.mxu2 %vm38_vm0, %v27_v2  ;;  %163 = vmatmul.msk.f32.vlgmr.msra.gmra.mxu3 %vm38_vm0, %v30_v3 }
   0x6   :  { %9 = vsyncpa [#allocation3], 0  ;;  %78 = vmatpush.msra.mxu0 %v32_v1  ;;  %v28_v5 = vld [vmem:[%s291_s0 + $0x20] sm:$0xff]  ;;  %v31_v6 = vld [vmem:[%s291_s0 + $0x38] sm:$0xff]  ;;  %vm22_vm1 = vcmask 257024   ;;  %v215_v14 = vmov 0.0  }
   0x7   :  { %157 = vmatmul.msk.f32.vlgmr.msra.gmra.mxu0 %vm38_vm0, %v24_v4  ;;  %v25_v7 = vld [vmem:[%s291_s0 + $0x8] sm:$0xff]  ;;  %v26_v9 = vld [vmem:[%s291_s0 + $0x10] sm:$0xff]  ;;  %23 = vst.msk [vmem:[#allocation2] sm:$0xf] %vm22_vm1, %v215_v14  ;;  %v172_v15 = vld [vmem:[%s293_s2] ss:$0 sm:$0xff] }
   0x8   :  { %v29_v8 = vld [vmem:[%s291_s0 + $0x28] sm:$0xff]  ;;  %v113_v35 = vld [vmem:[%s294_s3] sm:$0xf]  ;;  %vm114_vm2 = vcmask 523264   ;;  %s216_s10 = smov [#allocation2]   ;;  %s148_s14 = sshll.u32 %s295_s4, 4  ;;  %s149_s14 = int_to_ptr.hbm [resolvable:$true] %s148_s14 }
   0x9   :  { %s146_s11 = sshll.u32 %s216_s10, 4  ;;  %s147_s11 = int_to_ptr.vmem [resolvable:$true] %s146_s11 }
   0xd   :  { %161 = vmatmul.msk.f32.gmra.mxu2 %vm38_vm0, %v28_v5  ;;  %164 = vmatmul.msk.f32.gmra.mxu3 %vm38_vm0, %v31_v6 }
   0xe   :  { %v112_v37 = vld [vmem:[#allocation2] sm:$0xf] }
   0xf   :  { %158 = vmatmul.msk.f32.gmra.mxu0 %vm38_vm0, %v25_v7 }
  0x15   :  { %162 = vmatmul.msk.f32.gmra.mxu2 %vm38_vm0, %v29_v8 }
  0x17   :  { %159 = vmatmul.msk.f32.gmra.mxu0 %vm38_vm0, %v26_v9 }
  0x84   :  { %v80_v10 = vpop.f32.mrf.mxu0 }
  0x85   :  { %v81_v30 = vadd.f32 %v172_v15, %v80_v10 }
  0x88   :  { %v89_v11 = vpop.f32.mrf.mxu2  ;;  %v98_v12 = vpop.f32.mrf.mxu3 }
  0x89   :  { %v99_v19 = vadd.f32 %v172_v15, %v98_v12  ;;  %v90_v25 = vadd.f32 %v172_v15, %v89_v11 }
  0x8c   :  { %v83_v13 = vpop.f32.mrf.mxu0 }
  0x8d   :  { %v84_v28 = vadd.f32 %v172_v15, %v83_v13 }
  0x90   :  { %v92_v16 = vpop.f32.mrf.mxu2  ;;  %v101_v17 = vpop.f32.mrf.mxu3 }
  0x91   :  { %v102_v18 = vadd.f32 %v172_v15, %v101_v17  ;;  %v93_v22 = vadd.f32 %v172_v15, %v92_v16 }
  0x93   :  { %173 = vtanh.f32 %v102_v18 }
  0x94   :  { %175 = vtanh.f32 %v99_v19  ;;  %v86_v21 = vpop.f32.mrf.mxu0 }
  0x95   :  { %v87_v26 = vadd.f32 %v172_v15, %v86_v21 }
  0x98   :  { %v95_v20 = vpop.f32.mrf.mxu2 }
  0x99   :  { %v96_v23 = vadd.f32 %v172_v15, %v95_v20  ;;  %v174_v24 = vpop.eup %173 }
  0x9a   :  { %126 = vmatpush.msra.mxu1 %v174_v24  ;;  %v176_v27 = vpop.eup %175 }
  0x9b   :  { %177 = vtanh.f32 %v96_v23 }
  0x9c   :  { %179 = vtanh.f32 %v93_v22  ;;  %127 = vmatpush.msra.mxu1 %v176_v27 }
  0x9d   :  { %181 = vtanh.f32 %v90_v25 }
  0x9e   :  { %183 = vtanh.f32 %v87_v26 }
  0x9f   :  { %185 = vtanh.f32 %v84_v28 }
  0xa0   :  { %187 = vtanh.f32 %v81_v30 }
  0xa1   :  { %v178_v29 = vpop.eup %177 }
  0xa2   :  { %128 = vmatpush.msra.mxu1 %v178_v29  ;;  %v180_v31 = vpop.eup %179 }
  0xa3   :  { %v182_v32 = vpop.eup %181 }
  0xa4   :  { %129 = vmatpush.msra.mxu1 %v180_v31  ;;  %v184_v33 = vpop.eup %183 }
  0xa5   :  { %v186_v34 = vpop.eup %185 }
  0xa6   :  { %130 = vmatpush.msra.mxu1 %v182_v32  ;;  %v188_v36 = vpop.eup %187 }
  0xa8   :  { %131 = vmatpush.msra.mxu1 %v184_v33 }
  0xaa   :  { %132 = vmatpush.msra.mxu1 %v186_v34 }
  0xac   :  { %133 = vmatpush.msra.mxu1 %v188_v36 }
  0xad   :  { %165 = vmatmul.msk.f32.vlgmr.msra.gmra.mxu1 %vm114_vm2, %v113_v35 }
 0x12a   :  { %v135_v38 = vpop.f32.mrf.mxu1 }
 0x12b   :  { %v138_v39 = vadd.f32 %v135_v38, %v112_v37 }
 0x12d   :  { %140 = vst.msk [vmem:[#allocation2] sm:$0xf] %vm22_vm1, %v138_v39 }
 0x12e   :  { %151 = dma.vmem_to_hbm [thread:$0]  %s147_s11, 64, %s149_s14, [#allocation3]  }
 0x12f   :  { %213 = dma.done.wait [#allocation3], 64  }
 0x130   :  { %214 = vsyncadd [#allocation3], 4294967232 }
 0x131   :  { %156 = vsyncpa [#allocation3], 1 }

</bundles_post_ra>
